<compile_context>
chip_gen: v7x
topology: tpu7x:2x2x1
jax: 0.10.0
libtpu: 0.0.40
codegen_flags: <defaults>
</compile_context>

<pallas_src>
import functools

import jax
import jax.numpy as jnp
from jax.experimental import pallas as pl
from jax.experimental.pallas import tpu as pltpu


# ----------------------------------------------------------------------------- config
_LN_EPS = 1e-6
_DIMS = (96, 192, 384, 768)          # real ConvNeXt-Tiny channel counts
_DIMS_PAD = (128, 256, 384, 768)     # lane-dense internal channel counts
_DEPTHS = (3, 3, 9, 3)
_HID_TILES = (512, 384, 256, 128)


def _vmem_limit_bytes():
    cap = 64 * 1024 * 1024
    try:
        cap = int(pltpu.get_tpu_info().vmem_capacity_bytes)
    except Exception:
        pass
    return min(100 * 1024 * 1024, (cap * 3) // 4)


_VMEM_LIMIT = _vmem_limit_bytes()


def _cparams(sems):
    return pltpu.CompilerParams(dimension_semantics=sems, vmem_limit_bytes=_VMEM_LIMIT)


def _round_up(x, m):
    return ((x + m - 1) // m) * m


def _pick_tile(dim, candidates):
    for c in candidates:
        if c <= dim and dim % c == 0:
            return c
    return dim


def _pick_m_tile(m):
    # Largest MXU-friendly tile that still gives >=2 grid steps (v7x both-cores busy).
    for t in (256, 128, 64, 32, 16, 8):
        if m % t == 0 and m // t >= 2:
            return t
    return m


def _layernorm_masked(x, gamma, beta, c_real):
    """LayerNorm over the last axis where only the first c_real channels are real.

    Padded channels of x are exactly zero, and gamma/beta are zero there, so the
    padded channels of the output are exactly zero as well.
    """
    c_pad = x.shape[-1]
    n_pad = c_pad - c_real
    mean = jnp.sum(x, axis=-1, keepdims=True) / c_real
    xc = x - mean
    ssq = jnp.sum(xc * xc, axis=-1, keepdims=True) - n_pad * (mean * mean)
    var = ssq / c_real
    return xc * jax.lax.rsqrt(var + _LN_EPS) * gamma + beta


# ----------------------------------------------------------------------------- kernels
def _stem_kernel(a_ref, w_ref, b_ref, g_ref, beta_ref, o_ref, *, c_real):
    # 4x4/s4 patchify conv as a bf16 matmul (f32 acc) + bias + channel LayerNorm2d.
    acc = jnp.dot(a_ref[...].astype(jnp.bfloat16), w_ref[...],
                  preferred_element_type=jnp.float32) + b_ref[...]
    o_ref[...] = _layernorm_masked(acc, g_ref[...], beta_ref[...], c_real)


def _dwconv7_kernel(x_ref, w_ref, b_ref, o_ref, pad_ref, *, H, W):
    # Depthwise 7x7 conv, padding=3.  Halo built in a VMEM scratch (no HBM pad),
    # 7 vertical taps = 7 row loads, accumulator stays a value (registers).
    C = o_ref.shape[-1]
    pad_ref[...] = jnp.zeros_like(pad_ref)
    pad_ref[3:3 + H, 3:3 + W, :] = x_ref[0]
    wv = w_ref[...]                                  # (49, 1, C)
    acc = jnp.zeros((H, W, C), jnp.float32)
    for i in range(7):
        row = pad_ref[i:i + H, :, :]                 # (H, W+6, C) single load
        for j in range(7):
            acc = acc + row[:, j:j + W, :] * wv[i * 7 + j]
    o_ref[0] = acc + b_ref[...]


def _cnblock_mlp_kernel(dw_ref, g_ref, beta_ref, w1_ref, b1_ref, w2_ref, b2_ref,
                        ls_ref, res_ref, o_ref, xn_ref, acc_ref, *, c_real):
    # Fused: LN -> W1 -> GELU -> W2 (hidden-dim chunks on grid axis 1) -> bias
    # -> layer_scale -> residual.  LN done once per M tile, cached in VMEM scratch.
    h = pl.program_id(1)

    @pl.when(h == 0)
    def _():
        xn = _layernorm_masked(dw_ref[...], g_ref[...], beta_ref[...], c_real)
        xn_ref[...] = xn.astype(jnp.bfloat16)
        acc_ref[...] = jnp.zeros_like(acc_ref)

    hid = jnp.dot(xn_ref[...], w1_ref[...], preferred_element_type=jnp.float32)
    hid = hid + b1_ref[...]
    # TODO(synk): torchvision uses exact erf GELU; tanh approximation used here.
    hid = jax.nn.gelu(hid, approximate=True).astype(jnp.bfloat16)
    acc_ref[...] += jnp.dot(hid, w2_ref[...], preferred_element_type=jnp.float32)

    @pl.when(h == pl.num_programs(1) - 1)
    def _():
        o_ref[...] = ((acc_ref[...] + b2_ref[...]) * ls_ref[...]
                      + res_ref[...]).astype(o_ref.dtype)


def _downsample_kernel(a_ref, g_ref, beta_ref, w_ref, b_ref, o_ref, *, c_real):
    # LayerNorm2d + 2x2/s2 conv (stride==kernel): 4 tap matmuls accumulated in f32.
    xn = _layernorm_masked(a_ref[...], g_ref[...], beta_ref[...], c_real)
    xn = xn.astype(jnp.bfloat16)
    acc = jnp.dot(xn[0], w_ref[0], preferred_element_type=jnp.float32)
    for g in range(1, 4):
        acc = acc + jnp.dot(xn[g], w_ref[g], preferred_element_type=jnp.float32)
    o_ref[...] = acc + b_ref[...]


def _head_kernel(a_ref, g_ref, beta_ref, w_ref, b_ref, o_ref, *, c_real):
    # LayerNorm2d(768) + Linear(768, num_classes) on the pooled features.
    xn = _layernorm_masked(a_ref[...], g_ref[...], beta_ref[...], c_real)
    xn = xn.astype(jnp.bfloat16)
    o_ref[...] = jnp.dot(xn, w_ref[...], preferred_element_type=jnp.float32) + b_ref[...]


# ----------------------------------------------------------------------------- wrappers
def _dwconv7(x, w, b):
    N, H, W, C = x.shape
    return pl.pallas_call(
        functools.partial(_dwconv7_kernel, H=H, W=W),
        out_shape=jax.ShapeDtypeStruct((N, H, W, C), jnp.float32),
        grid=(N,),
        in_specs=[
            pl.BlockSpec((1, H, W, C), lambda n: (n, 0, 0, 0)),
            pl.BlockSpec((49, 1, C), lambda n: (0, 0, 0)),
            pl.BlockSpec((1, C), lambda n: (0, 0)),
        ],
        out_specs=pl.BlockSpec((1, H, W, C), lambda n: (n, 0, 0, 0)),
        scratch_shapes=[pltpu.VMEM((H + 6, W + 6, C), jnp.float32)],
        compiler_params=_cparams(("parallel",)),
    )(x, w, b)


def _cnblock_mlp(dw2d, resid2d, p, c_real):
    Mp, C = dw2d.shape
    Hdim = p["w1"].shape[1]                          # 4 * c_real (multiple of 128)
    tm = _pick_m_tile(Mp)
    th = _pick_tile(Hdim, _HID_TILES)
    return pl.pallas_call(
        functools.partial(_cnblock_mlp_kernel, c_real=c_real),
        out_shape=jax.ShapeDtypeStruct((Mp, C), jnp.float32),
        grid=(Mp // tm, Hdim // th),
        in_specs=[
            pl.BlockSpec((tm, C), lambda i, h: (i, 0)),    # dwconv output
            pl.BlockSpec((1, C), lambda i, h: (0, 0)),     # ln gamma
            pl.BlockSpec((1, C), lambda i, h: (0, 0)),     # ln beta
            pl.BlockSpec((C, th), lambda i, h: (0, h)),    # W1 chunk
            pl.BlockSpec((1, th), lambda i, h: (0, h)),    # b1 chunk
            pl.BlockSpec((th, C), lambda i, h: (h, 0)),    # W2 chunk
            pl.BlockSpec((1, C), lambda i, h: (0, 0)),     # b2
            pl.BlockSpec((1, C), lambda i, h: (0, 0)),     # layer_scale
            pl.BlockSpec((tm, C), lambda i, h: (i, 0)),    # residual
        ],
        out_specs=pl.BlockSpec((tm, C), lambda i, h: (i, 0)),
        scratch_shapes=[pltpu.VMEM((tm, C), jnp.bfloat16),   # cached LN(x)
                        pltpu.VMEM((tm, C), jnp.float32)],   # f32 accumulator
        compiler_params=_cparams(("parallel", "arbitrary")),
    )(dw2d, p["ln_g"], p["ln_b"], p["w1"], p["b1"], p["w2"], p["b2"], p["ls"], resid2d)


# ----------------------------------------------------------------------------- stages
@functools.partial(jax.jit, static_argnames=("c_real",))
def _stem_apply(x, p, *, c_real):
    # Conv2d(3, 96, k=4, s=4, bias=True) + LayerNorm2d.  stride==kernel -> patchify is
    # a reshape (no im2col duplication) + one fused matmul/LN kernel.
    N, H, W, Cin = x.shape
    Ho, Wo = H // 4, W // 4
    patches = x.reshape(N, Ho, 4, Wo, 4, Cin).transpose(0, 1, 3, 2, 4, 5)
    patches = patches.reshape(N * Ho * Wo, 16 * Cin)
    M, K = patches.shape
    Cout = p["w"].shape[1]
    Mp = _round_up(M, 8)
    if Mp != M:
        patches = jnp.pad(patches, ((0, Mp - M), (0, 0)))
    tm = _pick_m_tile(Mp)
    out = pl.pallas_call(
        functools.partial(_stem_kernel, c_real=c_real),
        out_shape=jax.ShapeDtypeStruct((Mp, Cout), jnp.float32),
        grid=(Mp // tm,),
        in_specs=[
            pl.BlockSpec((tm, K), lambda i: (i, 0)),
            pl.BlockSpec((K, Cout), lambda i: (0, 0)),
            pl.BlockSpec((1, Cout), lambda i: (0, 0)),
            pl.BlockSpec((1, Cout), lambda i: (0, 0)),
            pl.BlockSpec((1, Cout), lambda i: (0, 0)),
        ],
        out_specs=pl.BlockSpec((tm, Cout), lambda i: (i, 0)),
        compiler_params=_cparams(("parallel",)),
    )(patches, p["w"], p["b"], p["g"], p["beta"])
    return out[:M].reshape(N, Ho, Wo, Cout)


@functools.partial(jax.jit, static_argnames=("c_real",))
def _block_apply(x, p, *, c_real):
    # CNBlock: x + layer_scale * Linear2(GELU(Linear1(LN(dwconv7(x))))).
    N, H, W, C = x.shape
    M = N * H * W
    Mp = _round_up(M, 8)
    dw = _dwconv7(x, p["dw_w"], p["dw_b"])
    a = dw.reshape(M, C)
    resid = x.reshape(M, C)
    if Mp != M:
        a = jnp.pad(a, ((0, Mp - M), (0, 0)))
        resid = jnp.pad(resid, ((0, Mp - M), (0, 0)))
    out = _cnblock_mlp(a, resid, p, c_real)
    return out[:M].reshape(N, H, W, C)


@functools.partial(jax.jit, static_argnames=("c_real",))
def _downsample_apply(x, p, *, c_real):
    # LayerNorm2d(C) + Conv2d(C, 2C, k=2, s=2, bias=True).
    N, H, W, C = x.shape
    Ho, Wo = H // 2, W // 2
    Cout = p["w"].shape[-1]
    M = N * Ho * Wo
    # (kh, kw, n, ho, wo, c) -> (4, M, C); tap index g = kh*2 + kw matches weight layout.
    xg = x.reshape(N, Ho, 2, Wo, 2, C).transpose(2, 4, 0, 1, 3, 5).reshape(4, M, C)
    Mp = _round_up(M, 8)
    if Mp != M:
        xg = jnp.pad(xg, ((0, 0), (0, Mp - M), (0, 0)))
    tm = _pick_m_tile(Mp)
    out = pl.pallas_call(
        functools.partial(_downsample_kernel, c_real=c_real),
        out_shape=jax.ShapeDtypeStruct((Mp, Cout), jnp.float32),
        grid=(Mp // tm,),
        in_specs=[
            pl.BlockSpec((4, tm, C), lambda i: (0, i, 0)),
            pl.BlockSpec((1, 1, C), lambda i: (0, 0, 0)),
            pl.BlockSpec((1, 1, C), lambda i: (0, 0, 0)),
            pl.BlockSpec((4, C, Cout), lambda i: (0, 0, 0)),
            pl.BlockSpec((1, Cout), lambda i: (0, 0)),
        ],
        out_specs=pl.BlockSpec((tm, Cout), lambda i: (i, 0)),
        compiler_params=_cparams(("parallel",)),
    )(xg, p["g"], p["beta"], p["w"], p["b"])
    return out[:M].reshape(N, Ho, Wo, Cout)


@functools.partial(jax.jit, static_argnames=("c_real",))
def _head_apply(x, p, *, c_real):
    # AdaptiveAvgPool2d(1) (tiny XLA reduction) + fused LayerNorm2d + Linear kernel.
    N, _, _, C = x.shape
    feat = jnp.mean(x, axis=(1, 2))
    Mp = _round_up(N, 8)
    if Mp != N:
        feat = jnp.pad(feat, ((0, Mp - N), (0, 0)))
    ncls = p["w"].shape[1]
    out = pl.pallas_call(
        functools.partial(_head_kernel, c_real=c_real),
        out_shape=jax.ShapeDtypeStruct((Mp, ncls), jnp.float32),
        grid=(1,),
        in_specs=[
            pl.BlockSpec((Mp, C), lambda i: (0, 0)),
            pl.BlockSpec((1, C), lambda i: (0, 0)),
            pl.BlockSpec((1, C), lambda i: (0, 0)),
            pl.BlockSpec((C, ncls), lambda i: (0, 0)),
            pl.BlockSpec((1, ncls), lambda i: (0, 0)),
        ],
        out_specs=pl.BlockSpec((Mp, ncls), lambda i: (0, 0)),
        compiler_params=_cparams(("arbitrary",)),
    )(feat, p["g"], p["beta"], p["w"], p["b"])
    return out[:N]


# ----------------------------------------------------------------------------- params
def build_params(key, num_classes):
    keys = iter(jax.random.split(key, 128))

    def nrm(shape, std=0.02):
        return jax.random.normal(next(keys), shape, jnp.float32) * std

    def cmask(c_real, c_pad):
        return (jnp.arange(c_pad) < c_real).astype(jnp.float32)

    c0, p0 = _DIMS[0], _DIMS_PAD[0]
    m0 = cmask(c0, p0)
    params = {
        "stem": {
            # torch Conv2d weight (96, 3, 4, 4) stored as (kh*kw*cin, cout_pad) bf16
            "w": (nrm((4 * 4 * 3, p0)) * m0[None, :]).astype(jnp.bfloat16),
            "b": jnp.zeros((1, p0), jnp.float32),
            "g": m0[None, :],
            "beta": jnp.zeros((1, p0), jnp.float32),
        }
    }
    stages, downsamples = [], []
    for s in range(4):
        c, cp = _DIMS[s], _DIMS_PAD[s]
        hid = 4 * c                                  # 384/768/1536/3072, lane-aligned
        m = cmask(c, cp)
        blocks = []
        for _ in range(_DEPTHS[s]):
            blocks.append({
                # depthwise Conv2d(dim, dim, 7, padding=3, groups=dim): (49, 1, cp)
                "dw_w": nrm((49, 1, cp)) * m[None, None, :],
                "dw_b": jnp.zeros((1, cp), jnp.float32),
                "ln_g": m[None, :],
                "ln_b": jnp.zeros((1, cp), jnp.float32),
                # torch Linear weights stored transposed: (in, out), bf16 for the MXU
                "w1": (nrm((cp, hid)) * m[:, None]).astype(jnp.bfloat16),
                "b1": jnp.zeros((1, hid), jnp.float32),
                "w2": (nrm((hid, cp)) * m[None, :]).astype(jnp.bfloat16),
                "b2": jnp.zeros((1, cp), jnp.float32),
                "ls": (1e-6 * m)[None, :],           # layer_scale init
            })
        stages.append(blocks)
        if s < 3:
            cpn = _DIMS_PAD[s + 1]
            mn = cmask(_DIMS[s + 1], cpn)
            downsamples.append({
                "g": m[None, None, :],
                "beta": jnp.zeros((1, 1, cp), jnp.float32),
                # torch Conv2d weight (2C, C, 2, 2) stored as (4, cp, cpn), g = kh*2+kw
                "w": (nrm((4, cp, cpn))
                      * (m[None, :, None] * mn[None, None, :])).astype(jnp.bfloat16),
                "b": jnp.zeros((1, cpn), jnp.float32),
            })
    params["stages"] = stages
    params["downsample"] = downsamples
    cl = _DIMS[-1]
    params["head"] = {
        "g": jnp.ones((1, cl), jnp.float32),
        "beta": jnp.zeros((1, cl), jnp.float32),
        "w": nrm((cl, num_classes)).astype(jnp.bfloat16),
        "b": jnp.zeros((1, num_classes), jnp.float32),
    }
    return params


# ----------------------------------------------------------------------------- forward
def convnext_tiny_forward(params, x_nchw):
    """ConvNextTinyModel.forward: (N, 3, H, W) f32 -> (N, num_classes)."""
    x = jnp.transpose(x_nchw, (0, 2, 3, 1)).astype(jnp.float32)    # NCHW -> NHWC
    x = _stem_apply(x, params["stem"], c_real=_DIMS[0])
    for s in range(4):
        for blk in params["stages"][s]:
            x = _block_apply(x, blk, c_real=_DIMS[s])
        if s < 3:
            x = _downsample_apply(x, params["downsample"][s], c_real=_DIMS[s])
    return _head_apply(x, params["head"], c_real=_DIMS[-1])


# ----------------------------------------------------------------------------- main
if __name__ == "__main__":
    NUM_CLASSES = 10
    key = jax.random.PRNGKey(0)
    k_param, k_input = jax.random.split(key)

    params = build_params(k_param, NUM_CLASSES)
    # 32x32 input: spatial path 32 -> 8 -> 4 -> 2 -> 1 through the 4 ConvNeXt stages.
    x = jax.random.normal(k_input, (2, 3, 32, 32), jnp.float32)

    logits = convnext_tiny_forward(params, x)
    logits = jax.block_until_ready(logits)

    assert logits.shape == (2, NUM_CLASSES), logits.shape
    assert bool(jnp.all(jnp.isfinite(logits)))
    print("KERNEL_OK")
</pallas_src>

<mosaic_0001>
module attributes {stable_mosaic.version = 11 : i64} {
  func.func @_stem_kernel(%arg0: i32, %arg1: memref<64x48xf32, #tpu.memory_space<vmem>>, %arg2: memref<48x128xbf16, #tpu.memory_space<vmem>>, %arg3: memref<1x128xf32, #tpu.memory_space<vmem>>, %arg4: memref<1x128xf32, #tpu.memory_space<vmem>>, %arg5: memref<1x128xf32, #tpu.memory_space<vmem>>, %arg6: memref<64x128xf32, #tpu.memory_space<vmem>>) attributes {dimension_semantics = [#tpu.dimension_semantics<parallel>], iteration_bounds = array<i64: 2>, scalar_prefetch = 0 : i64, scratch_operands = 0 : i64, tpu.core_type = #tpu.core_type<tc>, window_params = [{transform_indices = @transform_0, window_bounds = array<i64: 64, 48>}, {pipeline_mode = #tpu.pipeline_mode<synchronous>, transform_indices = @transform_1, window_bounds = array<i64: 48, 128>}, {pipeline_mode = #tpu.pipeline_mode<synchronous>, transform_indices = @transform_2, window_bounds = array<i64: 1, 128>}, {pipeline_mode = #tpu.pipeline_mode<synchronous>, transform_indices = @transform_3, window_bounds = array<i64: 1, 128>}, {pipeline_mode = #tpu.pipeline_mode<synchronous>, transform_indices = @transform_4, window_bounds = array<i64: 1, 128>}, {transform_indices = @transform_5, window_bounds = array<i64: 64, 128>}]} {
    %c0 = arith.constant 0 : index
    %c0_0 = arith.constant 0 : index
    %0 = vector.load %arg1[%c0, %c0_0] : memref<64x48xf32, #tpu.memory_space<vmem>>, vector<64x48xf32>
    %1 = arith.truncf %0 : vector<64x48xf32> to vector<64x48xbf16>
    %c0_1 = arith.constant 0 : index
    %c0_2 = arith.constant 0 : index
    %2 = vector.load %arg2[%c0_1, %c0_2] : memref<48x128xbf16, #tpu.memory_space<vmem>>, vector<48x128xbf16>
    %cst = arith.constant dense<0.000000e+00> : vector<64x128xf32>
    %3 = tpu.matmul %1, %2, %cst {dimension_numbers = #tpu.dot_dimension_numbers<[1], [0], [0], [1], [0, 0, 1, 1], [], []>} : vector<64x48xbf16>, vector<48x128xbf16>, vector<64x128xf32> -> vector<64x128xf32>
    %c0_3 = arith.constant 0 : index
    %c0_4 = arith.constant 0 : index
    %4 = vector.load %arg3[%c0_3, %c0_4] : memref<1x128xf32, #tpu.memory_space<vmem>>, vector<1x128xf32>
    %5 = vector.broadcast %4 : vector<1x128xf32> to vector<64x128xf32>
    %6 = arith.addf %3, %5 : vector<64x128xf32>
    %c0_5 = arith.constant 0 : index
    %c0_6 = arith.constant 0 : index
    %7 = vector.load %arg4[%c0_5, %c0_6] : memref<1x128xf32, #tpu.memory_space<vmem>>, vector<1x128xf32>
    %c0_7 = arith.constant 0 : index
    %c0_8 = arith.constant 0 : index
    %8 = vector.load %arg5[%c0_7, %c0_8] : memref<1x128xf32, #tpu.memory_space<vmem>>, vector<1x128xf32>
    %cst_9 = arith.constant dense<0.000000e+00> : vector<64xf32>
    %9 = vector.multi_reduction <add>, %6, %cst_9 [1] : vector<64x128xf32> to vector<64xf32>
    %10 = vector.shape_cast %9 : vector<64xf32> to vector<64x1xf32>
    %cst_10 = arith.constant 9.600000e+01 : f32
    %11 = vector.broadcast %cst_10 : f32 to vector<64x1xf32>
    %12 = arith.divf %10, %11 : vector<64x1xf32>
    %13 = vector.broadcast %12 : vector<64x1xf32> to vector<64x128xf32>
    %14 = arith.subf %6, %13 : vector<64x128xf32>
    %15 = arith.mulf %14, %14 : vector<64x128xf32>
    %cst_11 = arith.constant dense<0.000000e+00> : vector<64xf32>
    %16 = vector.multi_reduction <add>, %15, %cst_11 [1] : vector<64x128xf32> to vector<64xf32>
    %17 = vector.shape_cast %16 : vector<64xf32> to vector<64x1xf32>
    %18 = arith.mulf %12, %12 : vector<64x1xf32>
    %cst_12 = arith.constant 3.200000e+01 : f32
    %19 = vector.broadcast %cst_12 : f32 to vector<64x1xf32>
    %20 = arith.mulf %19, %18 : vector<64x1xf32>
    %21 = arith.subf %17, %20 : vector<64x1xf32>
    %cst_13 = arith.constant 9.600000e+01 : f32
    %22 = vector.broadcast %cst_13 : f32 to vector<64x1xf32>
    %23 = arith.divf %21, %22 : vector<64x1xf32>
    %cst_14 = arith.constant 9.99999997E-7 : f32
    %24 = vector.broadcast %cst_14 : f32 to vector<64x1xf32>
    %25 = arith.addf %23, %24 : vector<64x1xf32>
    %26 = math.rsqrt %25 : vector<64x1xf32>
    %27 = vector.broadcast %26 : vector<64x1xf32> to vector<64x128xf32>
    %28 = arith.mulf %14, %27 : vector<64x128xf32>
    %29 = vector.broadcast %7 : vector<1x128xf32> to vector<64x128xf32>
    %30 = arith.mulf %28, %29 : vector<64x128xf32>
    %31 = vector.broadcast %8 : vector<1x128xf32> to vector<64x128xf32>
    %32 = arith.addf %30, %31 : vector<64x128xf32>
    %c0_15 = arith.constant 0 : index
    %c0_16 = arith.constant 0 : index
    %33 = vector.load %arg6[%c0_15, %c0_16] : memref<64x128xf32, #tpu.memory_space<vmem>>, vector<64x128xf32>
    tpu.vector_store %arg6[%c0_15, %c0_16], %32 {strides = array<i32>} : memref<64x128xf32, #tpu.memory_space<vmem>>, vector<64x128xf32>,
    return
  }
  func.func @transform_0(%arg0: i32) -> (i32, i32) {
    %c0_i32 = arith.constant 0 : i32
    %c0_i32_0 = arith.constant 0 : i32
    return %arg0, %c0_i32 : i32, i32
  }
  func.func @transform_1(%arg0: i32) -> (i32, i32) {
    %c0_i32 = arith.constant 0 : i32
    %c0_i32_0 = arith.constant 0 : i32
    %c0_i32_1 = arith.constant 0 : i32
    return %c0_i32, %c0_i32_0 : i32, i32
  }
  func.func @transform_2(%arg0: i32) -> (i32, i32) {
    %c0_i32 = arith.constant 0 : i32
    %c0_i32_0 = arith.constant 0 : i32
    %c0_i32_1 = arith.constant 0 : i32
    return %c0_i32, %c0_i32_0 : i32, i32
  }
  func.func @transform_3(%arg0: i32) -> (i32, i32) {
    %c0_i32 = arith.constant 0 : i32
    %c0_i32_0 = arith.constant 0 : i32
    %c0_i32_1 = arith.constant 0 : i32
    return %c0_i32, %c0_i32_0 : i32, i32
  }
  func.func @transform_4(%arg0: i32) -> (i32, i32) {
    %c0_i32 = arith.constant 0 : i32
    %c0_i32_0 = arith.constant 0 : i32
    %c0_i32_1 = arith.constant 0 : i32
    return %c0_i32, %c0_i32_0 : i32, i32
  }
  func.func @transform_5(%arg0: i32) -> (i32, i32) {
    %c0_i32 = arith.constant 0 : i32
    %c0_i32_0 = arith.constant 0 : i32
    return %arg0, %c0_i32 : i32, i32
  }
}

</mosaic_0001>

<bundles_post_ra>
// kernel: _stem_apply.1
= control target key start
LH: loop header
LB: loop body
LE: loop exit
PB: predicated region body
PF: predicated region fallthrough
CT: control target
= control target key end

     0   :  { %10 = vsyncpa [#allocation3], 0  ;;  %s961_s0 = inlined_call_operand.vmem [shape: f32[128,48], index: 0, kind: input, shape index: {}]   ;;  %s962_s1 = inlined_call_operand.vmem [shape: bf16[48,128], index: 1, kind: input, shape index: {}]   ;;  %s963_s2 = inlined_call_operand.vmem [shape: f32[1,128], index: 2, kind: input, shape index: {}]   ;;  %s964_s3 = inlined_call_operand.vmem [shape: f32[1,128], index: 3, kind: input, shape index: {}]   ;;  %s965_s4 = inlined_call_operand.vmem [shape: f32[1,128], index: 4, kind: input, shape index: {}]   ;;  %s966_s5 = inlined_call_operand.hbm [shape: f32[128,128], index: 5, kind: output, shape index: {}]  }
   0x1   :  { %12 = vsyncpa [#allocation3 + $0x1], 0  ;;  %s782_s18 = smov 0   ;;  %s784_s19 = smov 0  }
   0x2   :  { %s786_s20 = smov 0   ;;  %s788_s21 = smov 0  }
   0x3 LB: > { %s803_s22 = sadd.s32 4294967295, %s747_s21   ;;  %s575_s23 = sadd.s32 4294967294, %s747_s21   ;;  %s747_s21 = sphi %s788_s21, %s972_s21   ;;  %s743_s20 = sphi %s786_s20, %s971_s20   ;;  %s739_s19 = sphi %s784_s19, %s970_s19   ;;  %s735_s18 = sphi %s782_s18, %s969_s18  }
   0x4   : > { %s807_s24 = sadd.s32 1, %s747_s21   ;;  %s135_s25 = sadd.s32 1, %s743_s20 }
   0x5   : > { %s132_s26 = ssub.s32 %s747_s21, %s807_s24  ;;  %p145_p0 = scmp.ne.s32.totalorder %s743_s20, %s739_s19 }
   0x6   : > { %p133_p1 = scmp.eq.s32.totalorder %s132_s26, 0  ;;  %p146_p2 = scmp.eq.s32.totalorder %s803_s22, 1 }
   0x7   : > { %p151_p3 = scmp.ne.s32.totalorder %s739_s19, %s735_s18  ;;  %p152_p4 = scmp.eq.s32.totalorder %s575_s23, 1 }
   0x8   : > { %s818_s27 = scalar_select %p133_p1, %s743_s20, %s135_s25  }
   0x9   : > { %p820_p5 = por %p146_p2, %p145_p0  ;;  %p824_p6 = por %p152_p4, %p151_p3 }
   0xa   : > { %p578_p7 = scmp.ge.s32.totalorder %s747_s21, 1  ;;  %p191_p8 = scmp.lt.s32.totalorder %s747_s21, 3 }
   0xc   : > { %p192_p9 = pnand %p578_p7, %p191_p8 }
   0xd   : > { %v666_v0 = vld [vmem:[%s962_s1] sm:$0xff] (!%p192_p9)   ;;  %s580_s7 = sshll.u32 (!%p192_p9), %s803_s22, 3  ;;  %v667_v1 = vld [vmem:[%s962_s1 + $0x8] sm:$0xff] (!%p192_p9)   ;;  %v668_v2 = vld [vmem:[%s962_s1 + $0x10] sm:$0xff] (!%p192_p9)   ;;  %vm270_vm0 = vcmask (!%p192_p9), 392192   ;;  %s216_s23 = sand.u32 (!%p192_p9), 1, %s739_s19  }
   0xe   : > { %195 = sbr.rel (%p192_p9) target bundleno = 587 (0x24b), region = 40  ;;  %p220_p10 = scmp.lt.s32.totalorder (!%p192_p9), %s580_s7, 15  ;;  %605 = vmatprep.subr.bf16.mxu0 (!%p192_p9), %v666_v0  ;;  %619 = vmatprep.subr.bf16.mxu1 (!%p192_p9), %v666_v0  ;;  %v582_v15 = vld [vmem:[%s963_s2] ss:$0 sm:$0xff] (!%p192_p9) }
   0xf   : > { %606 = vmatpush3.bf16.msra.mxu0 (!%p192_p9), %v666_v0  ;;  %622 = vmatpush3.bf16.msra.mxu1 (!%p192_p9), %v666_v0  ;;  %s579_s30 = sshll.u32 (!%p192_p9), %s216_s23, 6  ;;  %s597_s9 = sshll.u32 (!%p192_p9), %s803_s22, 10 }
  0x10   : > { %607 = vmatprep.subr.bf16.mxu0 (!%p192_p9), %v667_v1  ;;  %620 = vmatprep.subr.bf16.mxu1 (!%p192_p9), %v667_v1  ;;  %s894_s8 = scalar_lea.vmem (!%p192_p9), [#allocation2], %s579_s30  ;;  %s913_s13 = scalar_lea.hbm (!%p192_p9), %s966_s5, %s597_s9 }
  0x11   : > { %s513_s10 = sshll.u32 (!%p192_p9), %s894_s8, 4  ;;  %s920_s14 = scalar_lea.sflag (!%p192_p9), [#allocation3], %s216_s23  ;;  %s915_s10 = int_to_ptr.vmem [resolvable:$true] %s513_s10 }
  0x12   : > { %s685_s22 = scalar_lea.vmem (!%p192_p9), %s915_s10, 1024 }
  0x13   : > { %608 = vmatpush3.bf16.msra.mxu0 (!%p192_p9), %v667_v1  ;;  %623 = vmatpush3.bf16.msra.mxu1 (!%p192_p9), %v667_v1  ;;  %p686_p11 = scmp.ne.s32.totalorder (!%p192_p9), %s915_s10, %s685_s22 }
  0x14   : > { %609 = vmatprep.subr.bf16.mxu0 (!%p192_p9), %v668_v2  ;;  %621 = vmatprep.subr.bf16.mxu1 (!%p192_p9), %v668_v2 }
  0x15   : > { %s974_s7 = smov (!%p220_p10, %s580_s7), 15  ;;  %p687_p12 = pnand %p686_p11, %p820_p5 }
  0x16   : > { %s581_s12 = sshll.u32 %s974_s7, 3 }
  0x17   : > { %s223_s15 = scalar_lea.vmem %s961_s0, %s581_s12  ;;  %610 = vmatpush3.bf16.msra.mxu0 %v668_v2  ;;  %624 = vmatpush3.bf16.msra.mxu1 %v668_v2  ;;  %p688_p13 = pneg %p687_p12 }
  0x18   : > { %v227_v3 = vld [vmem:[%s223_s15] sm:$0xff]  ;;  %v228_v4 = vld [vmem:[%s223_s15 + $0x8] sm:$0xff]  ;;  %v229_v5 = vld [vmem:[%s223_s15 + $0x10] sm:$0xff] }
  0x19   : > { %v235_v6 = vpack.c.bf16 %v228_v4, %v227_v3  ;;  %v230_v7 = vld [vmem:[%s223_s15 + $0x18] sm:$0xff]  ;;  %v231_v8 = vld [vmem:[%s223_s15 + $0x20] sm:$0xff]  ;;  %v232_v9 = vld [vmem:[%s223_s15 + $0x28] sm:$0xff] }
  0x1a   : > { %v237_v10 = vpack.c.bf16 %v232_v9, %v231_v8  ;;  %v233_v11 = vld [vmem:[%s223_s15 + $0x30] sm:$0xff]  ;;  %v234_v12 = vld [vmem:[%s223_s15 + $0x38] sm:$0xff]  ;;  %v236_v13 = vpack.c.bf16 %v230_v7, %v229_v5  ;;  %s749_s15 = smov [#allocation2]  }
  0x1b   : > { %611 = vmatprep.mubr.msk.bf16.mxu0 %vm270_vm0, %v235_v6  ;;  %v238_v14 = vpack.c.bf16 %v234_v12, %v233_v11  ;;  %s689_s16 = sshll.u32 %s749_s15, 4  ;;  %s690_s16 = int_to_ptr.vmem [resolvable:$false] %s689_s16 }
  0x1c   : > { %615 = vmatprep.mubr.msk.bf16.mxu1 %vm270_vm0, %v237_v10  ;;  %612 = vmatmul.mubr.msk.bf16.vlgmr.msra.gmra.mrb[0].mxu0 %vm270_vm0, %v236_v13  ;;  %s691_s17 = scalar_lea.vmem %s690_s16, 2048  ;;  %p692_p0 = scmp.lt.s32.totalorder %s915_s10, %s690_s16 }
  0x1d   : > { %616 = vmatmul.mubr.msk.bf16.vlgmr.msra.gmra.mrb[0].mxu1 %vm270_vm0, %v238_v14  ;;  %p693_p1 = scmp.lt.s32.totalorder %s691_s17, %s685_s22 }
  0x1f   : > { %p694_p2 = por %p693_p1, %p692_p0 }
  0x21   : > { %p695_p3 = pnand %p694_p2, %p688_p13 }
  0xef   : > { %v613_v16 = vpop.f32.mrb[0].mxu0 }
  0xf0   : > { %v617_v17 = vpop.f32.mrb[0].mxu1  ;;  %v326_v18 = vadd.f32 %v613_v16, %v582_v15  ;;  %v317_v19 = vpop.f32.mrb[1].mxu0 }
  0xf1   : > { %v333_v20 = vpop.f32.mrb[1].mxu1  ;;  %v318_v21 = vadd.f32 %v582_v15, %v317_v19  ;;  %v614_v22 = vpop.f32.mrb[2].mxu0  ;;  %v342_v31 = vadd.f32 %v617_v17, %v582_v15 }
  0xf2   : > { %v618_v23 = vpop.f32.mrb[2].mxu1  ;;  %354 = vadd.xlane.f32.xlu1 %v326_v18  ;;  %v320_v24 = vpop.f32.mrb[3].mxu0  ;;  %v334_v26 = vadd.f32 %v582_v15, %v333_v20  ;;  %v329_v27 = vadd.f32 %v614_v22, %v582_v15 }
  0xf3   : > { %v336_v25 = vpop.f32.mrb[3].mxu1  ;;  %350 = vadd.xlane.f32.xlu0 %v318_v21  ;;  %v321_v29 = vadd.f32 %v582_v15, %v320_v24  ;;  %v345_v30 = vadd.f32 %v618_v23, %v582_v15 }
  0xf4   : > { %v337_v28 = vadd.f32 %v582_v15, %v336_v25 }
  0xf6   : > { %356 = vadd.xlane.f32.xlu1 %v329_v27 }
  0xf7   : > { %358 = vadd.xlane.f32.xlu0 %v334_v26 }
  0xfa   : > { %360 = vadd.xlane.f32.xlu1 %v337_v28 }
  0xfb   : > { %352 = vadd.xlane.f32.xlu0 %v321_v29 }
  0xfe   : > { %364 = vadd.xlane.f32.xlu1 %v345_v30 }
  0xff   : > { %362 = vadd.xlane.f32.xlu0 %v342_v31 }
 0x17f   : > { %v355_v32 = vpop.xlane.xlu1 %354 }
 0x180   : > { %v369_v33 = vmul.f32 0.010416667, %v355_v32  ;;  %v351_v34 = vpop.xlane.xlu0 %350 }
 0x181   : > { %v367_v35 = vmul.f32 0.010416667, %v351_v34 }
 0x182   : > { %v850_v36 = vsub.f32 %v326_v18, %v369_v33  ;;  %v409_v0 = vmul.f32 %v369_v33, %v369_v33 }
 0x183   : > { %v357_v37 = vpop.xlane.xlu1 %356  ;;  %v852_v38 = vsub.f32 %v318_v21, %v367_v35  ;;  %v407_v1 = vmul.f32 %v367_v35, %v367_v35 }
 0x184   : > { %v370_v39 = vmul.f32 0.010416667, %v357_v37  ;;  %v359_v40 = vpop.xlane.xlu0 %358  ;;  %v385_v41 = vmul.f32 %v850_v36, %v850_v36  ;;  %v417_v3 = vmul.f32 32.0, %v409_v0 }
 0x185   : > { %v371_v42 = vmul.f32 0.010416667, %v359_v40  ;;  %v383_v48 = vmul.f32 %v852_v38, %v852_v38  ;;  %v415_v9 = vmul.f32 32.0, %v407_v1 }
 0x186   : > { %v856_v43 = vsub.f32 %v329_v27, %v370_v39  ;;  %395 = vadd.xlane.f32.xlu0 %v385_v41  ;;  %v410_v2 = vmul.f32 %v370_v39, %v370_v39 }
 0x187   : > { %v361_v44 = vpop.xlane.xlu1 %360  ;;  %v858_v45 = vsub.f32 %v334_v26, %v371_v42  ;;  %v411_v6 = vmul.f32 %v371_v42, %v371_v42 }
 0x188   : > { %v353_v46 = vpop.xlane.xlu0 %352  ;;  %v386_v47 = vmul.f32 %v856_v43, %v856_v43  ;;  %v372_v49 = vmul.f32 0.010416667, %v361_v44  ;;  %v418_v8 = vmul.f32 32.0, %v410_v2 }
 0x189   : > { %v368_v50 = vmul.f32 0.010416667, %v353_v46  ;;  %v387_v54 = vmul.f32 %v858_v45, %v858_v45  ;;  %v419_v16 = vmul.f32 32.0, %v411_v6 }
 0x18a   : > { %397 = vadd.xlane.f32.xlu1 %v386_v47  ;;  %391 = vadd.xlane.f32.xlu0 %v383_v48  ;;  %v868_v55 = vsub.f32 %v337_v28, %v372_v49  ;;  %v412_v17 = vmul.f32 %v372_v49, %v372_v49  ;;  %v590_v47 = vld [vmem:[%s964_s3] ss:$0 sm:$0xff] }
 0x18b   : > { %v864_v51 = vsub.f32 %v321_v29, %v368_v50  ;;  %v365_v52 = vpop.xlane.xlu1 %364  ;;  %v408_v10 = vmul.f32 %v368_v50, %v368_v50 }
 0x18c   : > { %v363_v53 = vpop.xlane.xlu0 %362  ;;  %v374_v56 = vmul.f32 0.010416667, %v365_v52  ;;  %v388_v61 = vmul.f32 %v868_v55, %v868_v55  ;;  %v420_v29 = vmul.f32 32.0, %v412_v17 }
 0x18d   : > { %v373_v57 = vmul.f32 0.010416667, %v363_v53  ;;  %v384_v58 = vmul.f32 %v864_v51, %v864_v51  ;;  %v416_v22 = vmul.f32 32.0, %v408_v10 }
 0x18e   : > { %399 = vadd.xlane.f32.xlu0 %v387_v54  ;;  %v874_v60 = vsub.f32 %v345_v30, %v374_v56  ;;  %v414_v30 = vmul.f32 %v374_v56, %v374_v56  ;;  %v591_v54 = vld [vmem:[%s965_s4] ss:$0 sm:$0xff] }
 0x18f   : > { %v872_v59 = vsub.f32 %v342_v31, %v373_v57  ;;  %393 = vadd.xlane.f32.xlu1 %v384_v58  ;;  %v413_v20 = vmul.f32 %v373_v57, %v373_v57 }
 0x190   : > { %v390_v63 = vmul.f32 %v874_v60, %v874_v60  ;;  %v422_v44 = vmul.f32 32.0, %v414_v30 }
 0x191   : > { %v389_v62 = vmul.f32 %v872_v59, %v872_v59  ;;  %v421_v32 = vmul.f32 32.0, %v413_v20 }
 0x193   : > { %401 = vadd.xlane.f32.xlu1 %v388_v61  ;;  %403 = vadd.xlane.f32.xlu0 %v389_v62 }
 0x197   : > { %405 = vadd.xlane.f32.xlu1 %v390_v63 }
 0x213   : > { %v396_v4 = vpop.xlane.xlu0 %395 }
 0x214   : > { %v425_v5 = vsub.f32 %v396_v4, %v417_v3 }
 0x216   : > { %v433_v7 = vmul.f32 0.010416667, %v425_v5 }
 0x217   : > { %v398_v11 = vpop.xlane.xlu1 %397  ;;  %v392_v12 = vpop.xlane.xlu0 %391 }
 0x218   : > { %v441_v13 = vadd.f32 1e-06, %v433_v7  ;;  %v426_v14 = vsub.f32 %v398_v11, %v418_v8  ;;  %v423_v15 = vsub.f32 %v392_v12, %v415_v9 }
 0x21a   : > { %669 = vrsqrt.f32 %v441_v13  ;;  %v434_v18 = vmul.f32 0.010416667, %v426_v14  ;;  %v431_v19 = vmul.f32 0.010416667, %v423_v15 }
 0x21b   : > { %v400_v21 = vpop.xlane.xlu0 %399 }
 0x21c   : > { %v442_v23 = vadd.f32 1e-06, %v434_v18  ;;  %v439_v24 = vadd.f32 1e-06, %v431_v19  ;;  %v427_v25 = vsub.f32 %v400_v21, %v419_v16  ;;  %v394_v26 = vpop.xlane.xlu1 %393 }
 0x21d   : > { %v424_v27 = vsub.f32 %v394_v26, %v416_v22 }
 0x21e   : > { %671 = vrsqrt.f32 %v442_v23  ;;  %v435_v28 = vmul.f32 0.010416667, %v427_v25 }
 0x21f   : > { %673 = vrsqrt.f32 %v439_v24  ;;  %v432_v31 = vmul.f32 0.010416667, %v424_v27 }
 0x220   : > { %v443_v33 = vadd.f32 1e-06, %v435_v28  ;;  %v402_v34 = vpop.xlane.xlu1 %401  ;;  %v404_v35 = vpop.xlane.xlu0 %403 }
 0x221   : > { %v440_v37 = vadd.f32 1e-06, %v432_v31  ;;  %v428_v39 = vsub.f32 %v402_v34, %v420_v29  ;;  %v429_v40 = vsub.f32 %v404_v35, %v421_v32 }
 0x222   : > { %675 = vrsqrt.f32 %v443_v33 }
 0x223   : > { %677 = vrsqrt.f32 %v440_v37  ;;  %v436_v41 = vmul.f32 0.010416667, %v428_v39  ;;  %v437_v42 = vmul.f32 0.010416667, %v429_v40 }
 0x224   : > { %v670_v46 = vpop.eup %669  ;;  %v406_v48 = vpop.xlane.xlu1 %405 }
 0x225   : > { %v457_v49 = vmul.f32 %v670_v46, %v850_v36  ;;  %v444_v50 = vadd.f32 1e-06, %v436_v41  ;;  %v445_v52 = vadd.f32 1e-06, %v437_v42  ;;  %v430_v53 = vsub.f32 %v406_v48, %v422_v44 }
 0x227   : > { %v471_v56 = vmul.f32 %v590_v47, %v457_v49  ;;  %679 = vrsqrt.f32 %v444_v50  ;;  %v438_v57 = vmul.f32 0.010416667, %v430_v53 }
 0x228   : > { %v672_v58 = vpop.eup %671  ;;  %681 = vrsqrt.f32 %v445_v52 }
 0x229   : > { %v674_v61 = vpop.eup %673  ;;  %v485_v62 = vadd.f32 %v591_v54, %v471_v56  ;;  %v458_v63 = vmul.f32 %v672_v58, %v856_v43  ;;  %v446_v0 = vadd.f32 1e-06, %v438_v57 }
 0x22a   : > { %v455_v1 = vmul.f32 %v674_v61, %v852_v38 }
 0x22b   : > { %493 = vst [vmem:[%s894_s8 + $0x10] sm:$0xff] %v485_v62  ;;  %v472_v36 = vmul.f32 %v590_v47, %v458_v63  ;;  %683 = vrsqrt.f32 %v446_v0 }
 0x22c   : > { %v676_v2 = vpop.eup %675  ;;  %v469_v3 = vmul.f32 %v590_v47, %v455_v1 }
 0x22d   : > { %v678_v4 = vpop.eup %677  ;;  %v486_v5 = vadd.f32 %v591_v54, %v472_v36  ;;  %v459_v6 = vmul.f32 %v676_v2, %v858_v45 }
 0x22e   : > { %v483_v43 = vadd.f32 %v591_v54, %v469_v3  ;;  %v456_v7 = vmul.f32 %v678_v4, %v864_v51 }
 0x22f   : > { %494 = vst [vmem:[%s894_s8 + $0x18] sm:$0xff] %v486_v5  ;;  %v473_v38 = vmul.f32 %v590_v47, %v459_v6 }
 0x230   : > { %491 = vst [vmem:[%s894_s8] sm:$0xff] %v483_v43  ;;  %v470_v8 = vmul.f32 %v590_v47, %v456_v7 }
 0x231   : > { %v680_v9 = vpop.eup %679  ;;  %v487_v10 = vadd.f32 %v591_v54, %v473_v38 }
 0x232   : > { %v682_v11 = vpop.eup %681  ;;  %v484_v12 = vadd.f32 %v591_v54, %v470_v8  ;;  %v460_v13 = vmul.f32 %v680_v9, %v868_v55 }
 0x233   : > { %495 = vst [vmem:[%s894_s8 + $0x20] sm:$0xff] %v487_v10  ;;  %v461_v45 = vmul.f32 %v682_v11, %v872_v59 }
 0x234   : > { %492 = vst [vmem:[%s894_s8 + $0x8] sm:$0xff] %v484_v12  ;;  %v474_v51 = vmul.f32 %v590_v47, %v460_v13 }
 0x235   : > { %v684_v14 = vpop.eup %683  ;;  %v475_v15 = vmul.f32 %v590_v47, %v461_v45 }
 0x236   : > { %v488_v16 = vadd.f32 %v591_v54, %v474_v51  ;;  %v462_v17 = vmul.f32 %v684_v14, %v874_v60 }
 0x237   : > { %v489_v18 = vadd.f32 %v591_v54, %v475_v15 }
 0x238   : > { %496 = vst [vmem:[%s894_s8 + $0x28] sm:$0xff] %v488_v16  ;;  %v476_v19 = vmul.f32 %v590_v47, %v462_v17 }
 0x239   : > { %497 = vst [vmem:[%s894_s8 + $0x30] sm:$0xff] %v489_v18 }
 0x23a   : > { %v490_v55 = vadd.f32 %v591_v54, %v476_v19 }
 0x23c   : > { %498 = vst [vmem:[%s894_s8 + $0x38] sm:$0xff] %v490_v55 }
 0x23d   : > { %698 = shalt.err (!%p695_p3)
}
 0x23e   : > { %s699_s23 = scalar_lea.hbm %s913_s13, 1024  ;;  %s703_s30 = scalar_lea.hbm %s966_s5, 2048 }
 0x23f   : > { %p700_p4 = scmp.ne.s32.totalorder %s913_s13, %s699_s23  ;;  %p704_p9 = scmp.lt.u32.totalorder %s913_s13, %s966_s5 }
 0x240   : > { %p705_p10 = scmp.lt.u32.totalorder %s703_s30, %s699_s23  ;;  %p707_p12 = scmp.lt.u32.totalorder %s699_s23, %s913_s13 }
 0x241   : > { %p701_p7 = pnand %p700_p4, %p820_p5 }
 0x242   : > { %p706_p11 = por %p705_p10, %p704_p9 }
 0x243   : > { %p702_p8 = pneg %p701_p7 }
 0x244   : > { %p708_p13 = por %p707_p12, %p706_p11 }
 0x246   : > { %p709_p0 = pnand %p708_p13, %p702_p8 }
 0x248   : > { %712 = shalt.err (!%p709_p0)
}
 0x249   : > { %s750_s8 = smov 128   ;;  %s751_s9 = smov 8  }
 0x24a   : > { %625 = dma.vmem_to_hbm [thread:$0]  (%p820_p5), %s915_s10, 1024, %s913_s13, %s920_s14, %s750_s8, %s750_s8, %s751_s9  }
 0x24b PF: > { %p631_p1 = scmp.ge.s32.totalorder %s747_s21, 2  ;;  %s528_s11 = sand.u32 1, %s735_s18  }
 0x24c   : > { %s529_s12 = scalar_lea.sflag [#allocation3], %s528_s11 }
 0x24d   : > { %p628_p2 = pnand %p631_p1, %p824_p6 }
 0x24f   : > { %730 = dma.done.wait (!%p628_p2), %s529_s12, 1024  }
 0x250   : > { %732 = vsyncadd (!%p628_p2), %s529_s12, 4294966272  ;;  %p15_p3 = scmp.ge.s32.totalorder %s807_s24, 4   ;;  %s969_s18 = smov %s739_s19 }
 0x251   : > { %s970_s19 = smov %s743_s20  ;;  %s971_s20 = smov %s818_s27 }
 0x252   : > { %s972_s21 = smov %s807_s24  ;;  %17 = sbr.rel (!%p15_p3) target bundleno = 3 (0x3), region = 75 }
 0x259   :  { %534 = vsyncpa [#allocation3], 1 }
 0x25a   :  { %536 = vsyncpa [#allocation3 + $0x1], 1 }

</bundles_post_ra>
